<compile_context>
chip_gen: v7x
topology: tpu7x:2x2x1
jax: 0.10.0
libtpu: 0.0.40
codegen_flags: <defaults>
</compile_context>

<pallas_src>
import jax
import jax.numpy as jnp
from jax.experimental import pallas as pl
from jax.experimental.pallas import tpu as pltpu

INTWIDTH = 3
FRACWIDTH = 4
MAX_VAL = float(2 ** (INTWIDTH + FRACWIDTH) - 1)   # 127
MIN_VAL = float(-(2 ** (INTWIDTH + FRACWIDTH)))    # -128
SCALE = float(2 ** FRACWIDTH)                      # 16

_LANE = 128
_SUBLANE = 8


def _round_math(x):
    """Fixed-point (1, 3, 4) rounding, dtype-preserving.

    bf16/f16/f32 compute in their native dtype: scaling by a power of two never
    changes the significand, |round(x*16)| <= 128 needs <= 8 significant bits,
    so the result is bit-identical to doing the math in f32 and downcasting.
    """
    if jnp.issubdtype(x.dtype, jnp.floating) and jnp.dtype(x.dtype).itemsize <= 4:
        xf = x
    else:
        xf = x.astype(jnp.float32)
    y = jnp.clip(jnp.round(xf * SCALE), MIN_VAL, MAX_VAL)   # half-to-even == torch.round
    return (y * (1.0 / SCALE)).astype(x.dtype)


def _round_kernel(x_ref, o_ref):
    o_ref[...] = _round_math(x_ref[...])


def _tpu_config():
    """(block_byte_budget, vmem_limit_bytes, min_grid_steps) per TPU generation."""
    block_bytes = 4 << 20       # 4 MiB/step: fine for v5e/v6e with an explicit limit
    min_steps = 4               # conservative default (harmless on 1-TC chips)
    try:
        info = pltpu.get_tpu_info()
        vmem = getattr(info, "vmem_capacity_bytes", None)
        if vmem is not None:
            if vmem <= (96 << 20):
                # v7x: 64 MiB VMEM/TC but ~3.2 TB/s HBM and 2 TCs -> bigger steps,
                # and >= 2 pipelined steps per TensorCore on small inputs.
                block_bytes = 8 << 20
                min_steps = 4
            else:
                # v5e / v6e: single TensorCore; 2 steps is enough for overlap.
                min_steps = 2
    except Exception:
        pass
    # 2x(in + out) double buffers + headroom for internal scratch.
    vmem_limit = 4 * block_bytes + (8 << 20)
    return block_bytes, vmem_limit, min_steps


def _pick_width(n):
    """Widest lane-dense last dim (multiple of 128) dividing n, else None."""
    for width in (4096, 2048, 1024, 512, 256, 128):
        if n % width == 0:
            return width
    return None


def _round_2d(x2d, block_bytes, vmem_limit, min_steps, donate=False):
    """Run the rounding kernel over a lane-dense (rows, width) slab."""
    rows, width = x2d.shape
    itemsize = jnp.dtype(x2d.dtype).itemsize
    max_block_rows = max(_SUBLANE, (block_bytes // itemsize // width) // _SUBLANE * _SUBLANE)

    if rows <= max_block_rows:
        # Small/medium input: keep >= min_steps grid steps (>= 2 per TensorCore on
        # v7x megacore) so input prefetch overlaps output writeback.
        if rows >= min_steps * _SUBLANE:
            block_rows = pl.cdiv(pl.cdiv(rows, min_steps), _SUBLANE) * _SUBLANE
        elif rows >= 2 * _SUBLANE:
            block_rows = pl.cdiv(pl.cdiv(rows, 2), _SUBLANE) * _SUBLANE
        else:
            block_rows = rows               # equals full dim -> layout rule satisfied
    else:
        block_rows = max_block_rows

    grid = (pl.cdiv(rows, block_rows),)      # ragged tail rows handled by Pallas masking

    extra = {}
    if donate:
        # Same-shape/same-dtype elementwise op: alias output onto the input buffer.
        # Only beneficial if the caller also donates at the jit boundary.
        extra["input_output_aliases"] = {0: 0}

    return pl.pallas_call(
        _round_kernel,
        out_shape=jax.ShapeDtypeStruct((rows, width), x2d.dtype),
        grid_spec=pltpu.PrefetchScalarGridSpec(
            num_scalar_prefetch=0,
            grid=grid,
            in_specs=[pl.BlockSpec((block_rows, width), lambda i: (i, 0))],
            out_specs=pl.BlockSpec((block_rows, width), lambda i: (i, 0)),
        ),
        compiler_params=pltpu.CompilerParams(
            dimension_semantics=("parallel",),
            vmem_limit_bytes=vmem_limit,
        ),
        **extra,
    )(x2d)


def unary_round(x: jnp.ndarray, donate: bool = False) -> jnp.ndarray:
    """Apply Round(intwidth=3, fracwidth=4) elementwise to x (any shape)."""
    orig_shape = x.shape
    orig_dtype = x.dtype
    if not jnp.issubdtype(orig_dtype, jnp.floating):
        # TODO(synk): integer tensors in the PyTorch module use true bit-shift
        # semantics; only the float path is implemented here.
        raise TypeError("unary_round implements the float-tensor semantics of Round.")
    n = x.size
    if n == 0:
        return x

    block_bytes, vmem_limit, min_steps = _tpu_config()

    flat = x.reshape(-1)                     # layout-preserving, no HBM copy
    width = _pick_width(n)
    if width is not None:                    # common case: lane-dense, no pad/slice
        out2d = _round_2d(flat.reshape(n // width, width),
                          block_bytes, vmem_limit, min_steps, donate)
        return out2d.reshape(orig_shape)

    # Ragged case (n % 128 != 0, rare): kernel on the 128-aligned prefix, plain
    # (tiny) jnp math on the <128-element tail. Avoids the previous full-array
    # jnp.pad of the input.
    # TODO(synk): a fully traffic-free tail needs in-kernel masked DMA (pl.ANY ref).
    aligned = (n // _LANE) * _LANE
    tail = _round_math(flat[aligned:])
    if aligned == 0:
        return tail.reshape(orig_shape)
    body_width = _pick_width(aligned)        # always succeeds: aligned % 128 == 0
    body = _round_2d(flat[:aligned].reshape(aligned // body_width, body_width),
                     block_bytes, vmem_limit, min_steps, donate=False)
    return jnp.concatenate([body.reshape(-1), tail]).reshape(orig_shape)


# TODO(synk): RoundingNoGrad's straight-through-estimator backward is autograd-only
# (no effect on the forward pass); only the forward is implemented here.

if __name__ == "__main__":
    key = jax.random.PRNGKey(0)
    k0, k1, k2 = jax.random.split(key, 3)

    # NCHW input, values spanning beyond the representable range to exercise clamping.
    x = jax.random.normal(k0, (2, 4, 16, 16), dtype=jnp.float32) * 6.0
    y = unary_round(x)
    jax.block_until_ready(y)
    ref = jnp.clip(jnp.round(x * SCALE), MIN_VAL, MAX_VAL) / SCALE
    assert y.shape == x.shape and y.dtype == x.dtype
    assert jnp.array_equal(y, ref)

    # bf16 path (native-dtype in-kernel math must be bit-identical to f32 math).
    xb = (jax.random.normal(k1, (2, 4, 16, 16), dtype=jnp.float32) * 6.0).astype(jnp.bfloat16)
    yb = unary_round(xb)
    jax.block_until_ready(yb)
    refb = (jnp.clip(jnp.round(xb.astype(jnp.float32) * SCALE), MIN_VAL, MAX_VAL)
            / SCALE).astype(jnp.bfloat16)
    assert yb.shape == xb.shape and yb.dtype == xb.dtype
    assert jnp.array_equal(yb, refb)

    # Ragged path (size not a multiple of 128): aligned body + tiny tail.
    xr = jax.random.normal(k2, (7, 100), dtype=jnp.float32) * 6.0
    yr = unary_round(xr)
    jax.block_until_ready(yr)
    refr = jnp.clip(jnp.round(xr * SCALE), MIN_VAL, MAX_VAL) / SCALE
    assert yr.shape == xr.shape and yr.dtype == xr.dtype
    assert jnp.array_equal(yr, refr)

    print("KERNEL_OK")
</pallas_src>

<mosaic_0001>
module attributes {stable_mosaic.version = 11 : i64} {
  func.func @_round_kernel(%arg0: i32, %arg1: memref<1x2048xf32, #tpu.memory_space<vmem>>, %arg2: memref<1x2048xf32, #tpu.memory_space<vmem>>) attributes {dimension_semantics = [#tpu.dimension_semantics<parallel>], iteration_bounds = array<i64: 1>, scalar_prefetch = 0 : i64, scratch_operands = 0 : i64, tpu.core_type = #tpu.core_type<tc>, window_params = [{transform_indices = @transform_0, window_bounds = array<i64: 1, 2048>}, {transform_indices = @transform_1, window_bounds = array<i64: 1, 2048>}]} {
    %c0 = arith.constant 0 : index
    %c0_0 = arith.constant 0 : index
    %0 = vector.load %arg1[%c0, %c0_0] : memref<1x2048xf32, #tpu.memory_space<vmem>>, vector<1x2048xf32>
    %cst = arith.constant 1.600000e+01 : f32
    %1 = vector.broadcast %cst : f32 to vector<1x2048xf32>
    %2 = arith.mulf %0, %1 : vector<1x2048xf32>
    %3 = math.roundeven %2 : vector<1x2048xf32>
    %cst_1 = arith.constant -1.280000e+02 : f32
    %cst_2 = arith.constant 1.270000e+02 : f32
    %4 = vector.broadcast %cst_1 : f32 to vector<1x2048xf32>
    %5 = arith.maximumf %4, %3 : vector<1x2048xf32>
    %6 = vector.broadcast %cst_2 : f32 to vector<1x2048xf32>
    %7 = arith.minimumf %6, %5 : vector<1x2048xf32>
    %cst_3 = arith.constant 6.250000e-02 : f32
    %8 = vector.broadcast %cst_3 : f32 to vector<1x2048xf32>
    %9 = arith.mulf %7, %8 : vector<1x2048xf32>
    %c0_4 = arith.constant 0 : index
    %c0_5 = arith.constant 0 : index
    %10 = vector.load %arg2[%c0_4, %c0_5] : memref<1x2048xf32, #tpu.memory_space<vmem>>, vector<1x2048xf32>
    tpu.vector_store %arg2[%c0_4, %c0_5], %9 {strides = array<i32>} : memref<1x2048xf32, #tpu.memory_space<vmem>>, vector<1x2048xf32>,
    return
  }
  func.func @transform_0(%arg0: i32) -> (i32, i32) {
    %c0_i32 = arith.constant 0 : i32
    %c0_i32_0 = arith.constant 0 : i32
    return %arg0, %c0_i32 : i32, i32
  }
  func.func @transform_1(%arg0: i32) -> (i32, i32) {
    %c0_i32 = arith.constant 0 : i32
    %c0_i32_0 = arith.constant 0 : i32
    return %arg0, %c0_i32 : i32, i32
  }
}

</mosaic_0001>

<bundles_post_ra>
// kernel: tpu_custom_call.1
= control target key start
LH: loop header
LB: loop body
LE: loop exit
PB: predicated region body
PF: predicated region fallthrough
CT: control target
= control target key end

     0   :  { %6 = vsyncpa [#allocation3], 0  ;;  %s138_s0 = inlined_call_operand.hbm [shape: f32[1,2048], index: 0, kind: input, shape index: {}]   ;;  %s139_s1 = inlined_call_operand.hbm [shape: f32[1,2048], index: 1, kind: output, shape index: {}]  }
   0x1   :  { %7 = vsyncpa [#allocation4], 0  ;;  %s102_s6 = smov [#allocation2]   ;;  %s54_s10 = scalar_lea.hbm %s138_s0, 256 }
   0x2   :  { %s14_s7 = sshll.u32 %s102_s6, 4  ;;  %p55_p0 = scmp.ne.s32.totalorder %s138_s0, %s54_s10  ;;  %s15_s7 = int_to_ptr.vmem [resolvable:$true] %s14_s7 }
   0x3   :  { %p58_p1 = scmp.lt.u32.totalorder %s54_s10, %s138_s0 }
   0x5   :  { %p60_p2 = pnand %p58_p1, %p55_p0 }
   0x7   :  { %63 = shalt.err (!%p60_p2)
}
   0x8   :  { %s64_s15 = scalar_lea.vmem %s15_s7, 256  ;;  %p69_p4 = scmp.lt.s32.totalorder %s15_s7, %s15_s7 }
   0x9   :  { %p65_p3 = scmp.ne.s32.totalorder %s15_s7, %s64_s15  ;;  %p70_p5 = scmp.lt.s32.totalorder %s64_s15, %s64_s15 }
   0xb   :  { %p71_p6 = por %p70_p5, %p69_p4 }
   0xd   :  { %p72_p7 = pnand %p71_p6, %p65_p3 }
   0xf   :  { %75 = shalt.err (!%p72_p7)
}
  0x10   :  { %17 = dma.hbm_to_vmem [thread:$0]  %s138_s0, 256, %s15_s7, [#allocation3]  }
  0x11   :  { %98 = dma.done.wait [#allocation3], 256  }
  0x12   :  { %99 = vsyncadd [#allocation3], 4294967040  ;;  %v21_v0 = vld [vmem:[#allocation2] sm:$0xff]  ;;  %v22_v1 = vld [vmem:[#allocation2 + $0x8] sm:$0xff]  ;;  %s103_s18 = smov [#allocation5]  }
  0x13   :  { %v23_v2 = vmul.f32 16.0, %v21_v0  ;;  %v24_v3 = vmul.f32 16.0, %v22_v1  ;;  %s41_s19 = sshll.u32 %s103_s18, 4  ;;  %s42_s19 = int_to_ptr.vmem [resolvable:$true] %s41_s19 }
  0x14   :  { %s76_s0 = scalar_lea.vmem %s42_s19, 256  ;;  %p81_p9 = scmp.lt.s32.totalorder %s42_s19, %s42_s19 }
  0x15   :  { %v50_v4 = vround.rtne.f32 %v23_v2  ;;  %v51_v5 = vround.rtne.f32 %v24_v3  ;;  %p77_p8 = scmp.ne.s32.totalorder %s42_s19, %s76_s0  ;;  %p82_p10 = scmp.lt.s32.totalorder %s76_s0, %s76_s0 }
  0x17   :  { %v27_v6 = vmax.f32 %v50_v4, -128.0  ;;  %v28_v7 = vmax.f32 %v51_v5, -128.0  ;;  %p83_p11 = por %p82_p10, %p81_p9 }
  0x19   :  { %v29_v8 = vmin.f32 %v27_v6, 127.0  ;;  %v30_v9 = vmin.f32 %v28_v7, 127.0  ;;  %p84_p12 = pnand %p83_p11, %p77_p8 }
  0x1b   :  { %v31_v10 = vmul.f32 0.0625, %v29_v8  ;;  %v32_v11 = vmul.f32 0.0625, %v30_v9 }
  0x1d   :  { %33 = vst [vmem:[#allocation5] sm:$0xff] %v31_v10  ;;  %34 = vst [vmem:[#allocation5 + $0x8] sm:$0xff] %v32_v11 }
  0x1e   :  { %87 = shalt.err (!%p84_p12)
}
  0x1f   :  { %s88_s22 = scalar_lea.hbm %s139_s1, 256 }
  0x20   :  { %p89_p13 = scmp.ne.s32.totalorder %s139_s1, %s88_s22  ;;  %p92_p0 = scmp.lt.u32.totalorder %s88_s22, %s139_s1 }
  0x22   :  { %p94_p1 = pnand %p92_p0, %p89_p13 }
  0x24   :  { %97 = shalt.err (!%p94_p1)
}
  0x25   :  { %44 = dma.vmem_to_hbm [thread:$0]  %s42_s19, 256, %s139_s1, [#allocation4]  }
  0x26   :  { %100 = dma.done.wait [#allocation4], 256  }
  0x27   :  { %101 = vsyncadd [#allocation4], 4294967040 }
  0x28   :  { %48 = vsyncpa [#allocation3], 1 }
  0x29   :  { %49 = vsyncpa [#allocation4], 1 }

</bundles_post_ra>
